<compile_context>
chip_gen: v6e
topology: v6e:2x2x1
jax: 0.10.0
libtpu: 0.0.40
codegen_flags: <defaults>
</compile_context>

<pallas_src>
import functools

import jax
import jax.numpy as jnp
from jax import lax
from jax.experimental import pallas as pl
from jax.experimental.pallas import tpu as pltpu


def _elu(x):
    # ELU with alpha=1.0 (PyTorch default): x if x > 0 else exp(x) - 1.
    # exp is evaluated on the clamped-to-<=0 branch only, so no inf is produced
    # for large positive x (and boundary-block garbage rows stay finite).
    return jnp.where(x > 0, x, jnp.exp(jnp.minimum(x, 0.0)) - 1.0)


def _critic_kernel(x_ref, w1_ref, b1_ref, w2_ref, b2_ref, w3_ref, b3_ref,
                   o_ref, *, compute_dtype):
    """One batch tile: x [TILE_B, obs] -> value row [1, TILE_B]."""
    # State arrives in the caller's dtype; cast (if needed) here, NOT in the
    # wrapper, so no extra HBM pass is spent on it.
    x = x_ref[...].astype(compute_dtype)              # [TILE_B, obs]

    # Linear(obs_size, 64) + ELU   (MXU, f32 accumulate)
    h1 = jnp.dot(x, w1_ref[...], preferred_element_type=jnp.float32) + b1_ref[...]
    h1 = _elu(h1).astype(w2_ref.dtype)                # back to MXU input dtype

    # Linear(64, 64) + ELU
    h2 = jnp.dot(h1, w2_ref[...], preferred_element_type=jnp.float32) + b2_ref[...]
    h2 = _elu(h2)                                     # [TILE_B, 64] f32

    # Linear(64, 1): contract H between w3_row [1, H] and h2 [TILE_B, H]; the
    # MXU emits the lane-dense [1, TILE_B] row directly (no XLU relayout tail).
    v = lax.dot_general(
        w3_ref[...], h2,
        dimension_numbers=(((1,), (1,)), ((), ())),
        preferred_element_type=jnp.float32,
    )                                                 # [1, TILE_B]
    o_ref[...] = (v + b3_ref[0]).astype(o_ref.dtype)


def critic_net_forward(state, params, *, tile_b=1024, compute_dtype=jnp.float32):
    """state: [B, obs_size]; params dict with w* as [in, out], b* as [1, out].

    Returns the value head, shape [B, 1] (float32).
    """
    B, obs_size = state.shape
    H = params["w1"].shape[1]
    itemsize = jnp.dtype(state.dtype).itemsize

    # Tile selection (multiple of 128 for a lane-dense output row):
    #   * VMEM cap: double-buffered state tile <= ~16 MiB (fits every
    #     generation's scoped default, incl. v7x's 64 MiB VMEM / 32 MiB scoped).
    #   * >=2 grid steps when B allows, so the "parallel" batch axis can shard
    #     across v7x's two TensorCores (no-op on single-TC v5e/v6e).
    vmem_cap_rows = max(128, ((16 << 20) // (2 * obs_size * itemsize)) // 128 * 128)
    half_rows = max(128, pl.cdiv(pl.cdiv(B, 2), 128) * 128)
    tile_b = max(128, (min(tile_b, vmem_cap_rows, half_rows) // 128) * 128)
    num_tiles = pl.cdiv(B, tile_b)

    # Weight/bias casts: tiny, DMA'd once (constant index_maps) -> wrapper-side
    # cast is negligible, unlike state.
    w1 = params["w1"].astype(compute_dtype)                     # [obs, H]
    w2 = params["w2"].astype(compute_dtype)                     # [H, H]
    b1 = params["b1"].astype(jnp.float32).reshape(1, H)         # [1, H]
    b2 = params["b2"].astype(jnp.float32).reshape(1, H)         # [1, H]
    w3_row = params["w3"].astype(jnp.float32).reshape(1, H)     # [1, H] (== w3.T)
    b3 = params["b3"].astype(jnp.float32).reshape(1)            # scalar via SMEM

    out = pl.pallas_call(
        functools.partial(_critic_kernel, compute_dtype=compute_dtype),
        out_shape=jax.ShapeDtypeStruct((num_tiles, tile_b), jnp.float32),
        grid=(num_tiles,),
        in_specs=[
            # state: tiled along batch, pipelined per step.  The ragged last
            # block is handled by Pallas boundary clipping; tail rows hold
            # unspecified data and are discarded by the wrapper's [:B] slice.
            pl.BlockSpec((tile_b, obs_size), lambda i: (i, 0)),
            # weights / biases: constant block index -> fetched once, resident.
            pl.BlockSpec((obs_size, H), lambda i: (0, 0)),
            pl.BlockSpec((1, H), lambda i: (0, 0)),
            pl.BlockSpec((H, H), lambda i: (0, 0)),
            pl.BlockSpec((1, H), lambda i: (0, 0)),
            pl.BlockSpec((1, H), lambda i: (0, 0)),
            # b3: scalar in SMEM (avoids a padded VMEM tile + its DMA).
            pl.BlockSpec(memory_space=pltpu.MemorySpace.SMEM),
        ],
        # Lane-dense [1, TILE_B] row per grid step, stored layout-matched to
        # the dot_general result.
        out_specs=pl.BlockSpec((1, tile_b), lambda i: (i, 0)),
        compiler_params=pltpu.CompilerParams(
            dimension_semantics=("parallel",),   # megacore sharding on v7x
        ),
    )(state, w1, b1, w2, b2, w3_row, b3)

    # Free layout plumbing back to the module's [B, 1] contract.
    return out.reshape(num_tiles * tile_b)[:B].reshape(B, 1)


def init_params(key, obs_size, hidden=64):
    """Deterministic synthetic init (matches nn.Linear shapes: obs->64->64->1)."""
    ks = jax.random.split(key, 6)

    def lin(kw, kb, fan_in, fan_out):
        bound = 1.0 / jnp.sqrt(fan_in)
        w = jax.random.uniform(kw, (fan_in, fan_out), jnp.float32, -bound, bound)
        b = jax.random.uniform(kb, (1, fan_out), jnp.float32, -bound, bound)
        return w, b

    w1, b1 = lin(ks[0], ks[1], obs_size, hidden)
    w2, b2 = lin(ks[2], ks[3], hidden, hidden)
    w3, b3 = lin(ks[4], ks[5], hidden, 1)
    return {"w1": w1, "b1": b1, "w2": w2, "b2": b2, "w3": w3, "b3": b3}


def reference_forward(state, p):
    x = state.astype(jnp.float32)
    h1 = jax.nn.elu(x @ p["w1"] + p["b1"])
    h2 = jax.nn.elu(h1 @ p["w2"] + p["b2"])
    return h2 @ p["w3"] + p["b3"]


if __name__ == "__main__":
    key = jax.random.PRNGKey(0)
    k_param, k_state, k_state2 = jax.random.split(key, 3)

    obs_size = 32   # observation/state size
    n_actions = 4   # unused by forward (kept for parity with the module)
    n_agents = 2    # unused by forward
    batch = 8

    params = init_params(k_param, obs_size)
    state = jax.random.normal(k_state, (batch, obs_size), jnp.float32)

    # f32 path (matches the PyTorch module's state.float() semantics).
    value = critic_net_forward(state, params)
    value = jax.block_until_ready(value)
    ref = reference_forward(state, params)
    assert value.shape == (batch, 1)
    assert jnp.allclose(value, ref, atol=1e-4, rtol=1e-4), (
        f"f32 mismatch: max abs err {jnp.max(jnp.abs(value - ref))}")

    # Larger, non-tile-divisible batch: exercises the multi-tile grid (>=2
    # steps for the parallel axis), boundary-block tail handling, no padding.
    batch2 = 300
    state2 = jax.random.normal(k_state2, (batch2, obs_size), jnp.float32)
    value2 = jax.block_until_ready(critic_net_forward(state2, params))
    ref2 = reference_forward(state2, params)
    assert value2.shape == (batch2, 1)
    assert jnp.allclose(value2, ref2, atol=1e-4, rtol=1e-4), (
        f"f32 multi-tile mismatch: max abs err {jnp.max(jnp.abs(value2 - ref2))}")

    # bf16-compute / f32-accumulate path: state is DMA'd in its native dtype
    # and downcast in-kernel (pass bf16 state upstream to also halve its DMA).
    value_bf16 = jax.block_until_ready(
        critic_net_forward(state2, params, compute_dtype=jnp.bfloat16))
    assert value_bf16.shape == (batch2, 1)
    assert jnp.allclose(value_bf16, ref2, atol=5e-2, rtol=5e-2), (
        f"bf16 mismatch: max abs err {jnp.max(jnp.abs(value_bf16 - ref2))}")

    print("KERNEL_OK")
</pallas_src>

<mosaic_0001>
module attributes {stable_mosaic.version = 11 : i64} {
  func.func @_critic_kernel(%arg0: i32, %arg1: memref<128x32xf32, #tpu.memory_space<vmem>>, %arg2: memref<32x64xf32, #tpu.memory_space<vmem>>, %arg3: memref<1x64xf32, #tpu.memory_space<vmem>>, %arg4: memref<64x64xf32, #tpu.memory_space<vmem>>, %arg5: memref<1x64xf32, #tpu.memory_space<vmem>>, %arg6: memref<1x64xf32, #tpu.memory_space<vmem>>, %arg7: memref<1xf32, #tpu.memory_space<smem>>, %arg8: memref<1x128xf32, #tpu.memory_space<vmem>>) attributes {dimension_semantics = [#tpu.dimension_semantics<parallel>], iteration_bounds = array<i64: 1>, scalar_prefetch = 0 : i64, scratch_operands = 0 : i64, tpu.core_type = #tpu.core_type<tc>, window_params = [{transform_indices = @transform_0, window_bounds = array<i64: 128, 32>}, {pipeline_mode = #tpu.pipeline_mode<synchronous>, transform_indices = @transform_1, window_bounds = array<i64: 32, 64>}, {pipeline_mode = #tpu.pipeline_mode<synchronous>, transform_indices = @transform_2, window_bounds = array<i64: 1, 64>}, {pipeline_mode = #tpu.pipeline_mode<synchronous>, transform_indices = @transform_3, window_bounds = array<i64: 64, 64>}, {pipeline_mode = #tpu.pipeline_mode<synchronous>, transform_indices = @transform_4, window_bounds = array<i64: 1, 64>}, {pipeline_mode = #tpu.pipeline_mode<synchronous>, transform_indices = @transform_5, window_bounds = array<i64: 1, 64>}, {transform_indices = @transform_6, window_bounds = array<i64: 1>}, {transform_indices = @transform_7, window_bounds = array<i64: 1, 128>}]} {
    %c0 = arith.constant 0 : index
    %c0_0 = arith.constant 0 : index
    %0 = vector.load %arg1[%c0, %c0_0] : memref<128x32xf32, #tpu.memory_space<vmem>>, vector<128x32xf32>
    %c0_1 = arith.constant 0 : index
    %c0_2 = arith.constant 0 : index
    %1 = vector.load %arg2[%c0_1, %c0_2] : memref<32x64xf32, #tpu.memory_space<vmem>>, vector<32x64xf32>
    %cst = arith.constant dense<0.000000e+00> : vector<128x64xf32>
    %2 = tpu.matmul %0, %1, %cst {dimension_numbers = #tpu.dot_dimension_numbers<[1], [0], [0], [1], [0, 0, 1, 1], [], []>} : vector<128x32xf32>, vector<32x64xf32>, vector<128x64xf32> -> vector<128x64xf32>
    %c0_3 = arith.constant 0 : index
    %c0_4 = arith.constant 0 : index
    %3 = vector.load %arg3[%c0_3, %c0_4] : memref<1x64xf32, #tpu.memory_space<vmem>>, vector<1x64xf32>
    %4 = vector.broadcast %3 : vector<1x64xf32> to vector<128x64xf32>
    %5 = arith.addf %2, %4 : vector<128x64xf32>
    %cst_5 = arith.constant 0.000000e+00 : f32
    %6 = vector.broadcast %cst_5 : f32 to vector<128x64xf32>
    %7 = arith.cmpf ogt, %5, %6 : vector<128x64xf32>
    %cst_6 = arith.constant 0.000000e+00 : f32
    %8 = vector.broadcast %cst_6 : f32 to vector<128x64xf32>
    %9 = arith.minimumf %5, %8 : vector<128x64xf32>
    %10 = math.exp %9 : vector<128x64xf32>
    %cst_7 = arith.constant 1.000000e+00 : f32
    %11 = vector.broadcast %cst_7 : f32 to vector<128x64xf32>
    %12 = arith.subf %10, %11 : vector<128x64xf32>
    %13 = arith.select %7, %5, %12 : vector<128x64xi1>, vector<128x64xf32>
    %c0_8 = arith.constant 0 : index
    %c0_9 = arith.constant 0 : index
    %14 = vector.load %arg4[%c0_8, %c0_9] : memref<64x64xf32, #tpu.memory_space<vmem>>, vector<64x64xf32>
    %cst_10 = arith.constant dense<0.000000e+00> : vector<128x64xf32>
    %15 = tpu.matmul %13, %14, %cst_10 {dimension_numbers = #tpu.dot_dimension_numbers<[1], [0], [0], [1], [0, 0, 1, 1], [], []>} : vector<128x64xf32>, vector<64x64xf32>, vector<128x64xf32> -> vector<128x64xf32>
    %c0_11 = arith.constant 0 : index
    %c0_12 = arith.constant 0 : index
    %16 = vector.load %arg5[%c0_11, %c0_12] : memref<1x64xf32, #tpu.memory_space<vmem>>, vector<1x64xf32>
    %17 = vector.broadcast %16 : vector<1x64xf32> to vector<128x64xf32>
    %18 = arith.addf %15, %17 : vector<128x64xf32>
    %cst_13 = arith.constant 0.000000e+00 : f32
    %19 = vector.broadcast %cst_13 : f32 to vector<128x64xf32>
    %20 = arith.cmpf ogt, %18, %19 : vector<128x64xf32>
    %cst_14 = arith.constant 0.000000e+00 : f32
    %21 = vector.broadcast %cst_14 : f32 to vector<128x64xf32>
    %22 = arith.minimumf %18, %21 : vector<128x64xf32>
    %23 = math.exp %22 : vector<128x64xf32>
    %cst_15 = arith.constant 1.000000e+00 : f32
    %24 = vector.broadcast %cst_15 : f32 to vector<128x64xf32>
    %25 = arith.subf %23, %24 : vector<128x64xf32>
    %26 = arith.select %20, %18, %25 : vector<128x64xi1>, vector<128x64xf32>
    %c0_16 = arith.constant 0 : index
    %c0_17 = arith.constant 0 : index
    %27 = vector.load %arg6[%c0_16, %c0_17] : memref<1x64xf32, #tpu.memory_space<vmem>>, vector<1x64xf32>
    %cst_18 = arith.constant dense<0.000000e+00> : vector<1x128xf32>
    %28 = tpu.matmul %27, %26, %cst_18 {dimension_numbers = #tpu.dot_dimension_numbers<[1], [1], [0], [0], [0, 0, 1, 0], [], []>} : vector<1x64xf32>, vector<128x64xf32>, vector<1x128xf32> -> vector<1x128xf32>
    %c0_19 = arith.constant 0 : index
    %29 = memref.load %arg7[%c0_19] : memref<1xf32, #tpu.memory_space<smem>>
    %30 = vector.broadcast %29 : f32 to vector<1x128xf32>
    %31 = arith.addf %28, %30 : vector<1x128xf32>
    %c0_20 = arith.constant 0 : index
    %c0_21 = arith.constant 0 : index
    %32 = vector.load %arg8[%c0_20, %c0_21] : memref<1x128xf32, #tpu.memory_space<vmem>>, vector<1x128xf32>
    tpu.vector_store %arg8[%c0_20, %c0_21], %31 {strides = array<i32>} : memref<1x128xf32, #tpu.memory_space<vmem>>, vector<1x128xf32>,
    return
  }
  func.func @transform_0(%arg0: i32) -> (i32, i32) {
    %c0_i32 = arith.constant 0 : i32
    %c0_i32_0 = arith.constant 0 : i32
    return %arg0, %c0_i32 : i32, i32
  }
  func.func @transform_1(%arg0: i32) -> (i32, i32) {
    %c0_i32 = arith.constant 0 : i32
    %c0_i32_0 = arith.constant 0 : i32
    %c0_i32_1 = arith.constant 0 : i32
    return %c0_i32, %c0_i32_0 : i32, i32
  }
  func.func @transform_2(%arg0: i32) -> (i32, i32) {
    %c0_i32 = arith.constant 0 : i32
    %c0_i32_0 = arith.constant 0 : i32
    %c0_i32_1 = arith.constant 0 : i32
    return %c0_i32, %c0_i32_0 : i32, i32
  }
  func.func @transform_3(%arg0: i32) -> (i32, i32) {
    %c0_i32 = arith.constant 0 : i32
    %c0_i32_0 = arith.constant 0 : i32
    %c0_i32_1 = arith.constant 0 : i32
    return %c0_i32, %c0_i32_0 : i32, i32
  }
  func.func @transform_4(%arg0: i32) -> (i32, i32) {
    %c0_i32 = arith.constant 0 : i32
    %c0_i32_0 = arith.constant 0 : i32
    %c0_i32_1 = arith.constant 0 : i32
    return %c0_i32, %c0_i32_0 : i32, i32
  }
  func.func @transform_5(%arg0: i32) -> (i32, i32) {
    %c0_i32 = arith.constant 0 : i32
    %c0_i32_0 = arith.constant 0 : i32
    %c0_i32_1 = arith.constant 0 : i32
    return %c0_i32, %c0_i32_0 : i32, i32
  }
  func.func @transform_6(%arg0: i32) -> i32 {
    %c0_i32 = arith.constant 0 : i32
    %c0_i32_0 = arith.constant 0 : i32
    return %c0_i32 : i32
  }
  func.func @transform_7(%arg0: i32) -> (i32, i32) {
    %c0_i32 = arith.constant 0 : i32
    %c0_i32_0 = arith.constant 0 : i32
    return %arg0, %c0_i32 : i32, i32
  }
}

</mosaic_0001>

<bundles_post_ra>
// kernel: tpu_custom_call.1
= control target key start
LH: loop header
LB: loop body
LE: loop exit
PB: predicated region body
PF: predicated region fallthrough
CT: control target
= control target key end

     0   :  { %13 = vsyncpa [#allocation4], 0  ;;  %s1565_s0 = inlined_call_operand.hbm [shape: f32[8,32], index: 0, kind: input, shape index: {}]   ;;  %s1566_s1 = inlined_call_operand.hbm [shape: f32[32,64], index: 1, kind: input, shape index: {}]   ;;  %s1567_s2 = inlined_call_operand.vmem [shape: f32[1,64], index: 2, kind: input, shape index: {}]   ;;  %s1568_s3 = inlined_call_operand.hbm [shape: f32[64,64], index: 3, kind: input, shape index: {}]   ;;  %s1569_s4 = inlined_call_operand.vmem [shape: f32[1,64], index: 4, kind: input, shape index: {}]   ;;  %s1570_s5 = inlined_call_operand.vmem [shape: f32[1,64], index: 5, kind: input, shape index: {}]   ;;  %s1571_s6 = inlined_call_operand.<no memory space> [shape: f32[1], index: 6, kind: input, shape index: {}]   ;;  %s1572_s7 = inlined_call_operand.hbm [shape: f32[1,128], index: 7, kind: output, shape index: {}]  }
   0x1   :  { %14 = vsyncpa [#allocation7], 0 }
   0x2   :  { %15 = vsyncpa [#allocation5], 0 }
   0x3   :  { %20 = vsyncadd [#allocation4], 1920  ;;  %s1241_s24 = smov [#allocation6]   ;;  %s1242_s26 = smov [#allocation3]  }
   0x4   :  { %s33_s25 = sshll.u32 %s1241_s24, 4  ;;  %s21_s27 = sshll.u32 %s1242_s26, 4  ;;  %s34_s25 = int_to_ptr.vmem [resolvable:$true] %s33_s25  ;;  %s22_s27 = int_to_ptr.vmem [resolvable:$true] %s21_s27 }
   0x5   :  { %s1163_s28 = scalar_lea.vmem %s34_s25, 512  ;;  %p1168_p1 = scmp.lt.s32.totalorder %s34_s25, %s34_s25 }
   0x6   :  { %p1164_p0 = scmp.ne.s32.totalorder %s34_s25, %s1163_s28  ;;  %p1169_p2 = scmp.lt.s32.totalorder %s1163_s28, %s1163_s28 }
   0x8   :  { %p1170_p3 = por %p1169_p2, %p1168_p1 }
   0xa   :  { %p1171_p4 = pnand %p1170_p3, %p1164_p0 }
   0xc   :  { %1174 = shalt.err (!%p1171_p4)
}
   0xd   :  { %s1243_s29 = smov 128   ;;  %s1244_s30 = smov 8  }
   0xe   :  { %39 = dma.hbm_to_vmem [thread:$0]  %s1566_s1, 512, %s34_s25, [#allocation7], %s1243_s29, %s1243_s29, %s1244_s30  }
   0xf   :  { %s1183_s10 = scalar_lea.vmem %s22_s27, 128  ;;  %s1187_s11 = scalar_lea.vmem %s22_s27, 2048 }
  0x10   :  { %p1184_p5 = scmp.ne.s32.totalorder %s22_s27, %s1183_s10  ;;  %p1188_p6 = scmp.lt.s32.totalorder %s22_s27, %s22_s27 }
  0x11   :  { %p1189_p7 = scmp.lt.s32.totalorder %s1187_s11, %s1183_s10 }
  0x13   :  { %p1190_p8 = por %p1189_p7, %p1188_p6 }
  0x15   :  { %p1191_p9 = pnand %p1190_p8, %p1184_p5 }
  0x17   :  { %1194 = shalt.err (!%p1191_p9)
}
  0x18   :  { %27 = dma.hbm_to_vmem [thread:$0]  %s1565_s0, 128, %s22_s27, [#allocation4], %s1243_s29, %s1243_s29, %s1244_s30  }
  0x19   :  { %s1245_s14 = smov [#allocation8]  }
  0x1a   :  { %s47_s15 = sshll.u32 %s1245_s14, 4  ;;  %s48_s15 = int_to_ptr.vmem [resolvable:$true] %s47_s15 }
  0x1b   :  { %s1203_s16 = scalar_lea.vmem %s48_s15, 1024  ;;  %p1208_p11 = scmp.lt.s32.totalorder %s48_s15, %s48_s15 }
  0x1c   :  { %p1204_p10 = scmp.ne.s32.totalorder %s48_s15, %s1203_s16  ;;  %p1209_p12 = scmp.lt.s32.totalorder %s1203_s16, %s1203_s16 }
  0x1e   :  { %p1210_p13 = por %p1209_p12, %p1208_p11 }
  0x20   :  { %p1211_p0 = pnand %p1210_p13, %p1204_p10 }
  0x22   :  { %1214 = shalt.err (!%p1211_p0)
}
  0x23   :  { %53 = dma.hbm_to_vmem [thread:$0]  %s1568_s3, 1024, %s48_s15, [#allocation7], %s1243_s29, %s1243_s29, %s1244_s30  }
  0x24   :  { %1235 = dma.done.wait [#allocation4], 2048  }
  0x25   :  { %1236 = vsyncadd [#allocation4], 4294965248 }
  0x26   :  { %1237 = dma.done.wait [#allocation7], 1536  }
  0x27   :  { %1238 = vsyncadd [#allocation7], 4294965760  ;;  %vm96_vm0 = vcmask 261120   ;;  %v88_v0 = vld [vmem:[#allocation6 + $0x18] sm:$0xff]  ;;  %v87_v1 = vld [vmem:[#allocation6 + $0x10] sm:$0xff]  ;;  %vm401_vm1 = vcmask 523264  }
  0x28   :  { %976 = vmatprep.subr.mxu1 %v88_v0  ;;  %v69_v2 = vld [vmem:[#allocation3] sm:$0xff]  ;;  %v86_v3 = vld [vmem:[#allocation6 + $0x8] sm:$0xff]  ;;  %v393_v6 = vld [vmem:[#allocation8 + $0x38] sm:$0xff]  ;;  %s1248_s22 = smov [#allocation9]  }
  0x29   :  { %977 = vmatpush3.msra.mxu1 %v88_v0  ;;  %984 = vmatprep.mubr.msk.f32.mxu1 %vm96_vm0, %v69_v2  ;;  %v85_v4 = vld [vmem:[#allocation6] sm:$0xff]  ;;  %v70_v5 = vld [vmem:[#allocation3 + $0x8] sm:$0xff]  ;;  %v71_v7 = vld [vmem:[#allocation3 + $0x10] sm:$0xff]  ;;  %s822_s23 = sshll.u32 %s1248_s22, 4  ;;  %s823_s23 = int_to_ptr.vmem [resolvable:$true] %s822_s23 }
  0x2a   :  { %978 = vmatprep.subr.mxu1 %v87_v1  ;;  %v392_v8 = vld [vmem:[#allocation8 + $0x30] sm:$0xff]  ;;  %v72_v9 = vld [vmem:[#allocation3 + $0x18] sm:$0xff]  ;;  %v73_v10 = vld [vmem:[#allocation3 + $0x20] sm:$0xff]  ;;  %s1215_s24 = scalar_lea.vmem %s823_s23, 16  ;;  %s1219_s25 = scalar_lea.vmem %s823_s23, 32 }
  0x2b   :  { %979 = vmatpush3.msra.mxu1 %v87_v1  ;;  %v74_v11 = vld [vmem:[#allocation3 + $0x28] sm:$0xff]  ;;  %v75_v12 = vld [vmem:[#allocation3 + $0x30] sm:$0xff]  ;;  %v76_v13 = vld [vmem:[#allocation3 + $0x38] sm:$0xff]  ;;  %p1216_p1 = scmp.ne.s32.totalorder %s823_s23, %s1215_s24  ;;  %p1220_p2 = scmp.lt.s32.totalorder %s823_s23, %s823_s23 }
  0x2c   :  { %980 = vmatprep.subr.mxu1 %v86_v3  ;;  %v77_v14 = vld [vmem:[#allocation3 + $0x40] sm:$0xff]  ;;  %v78_v15 = vld [vmem:[#allocation3 + $0x48] sm:$0xff]  ;;  %v79_v16 = vld [vmem:[#allocation3 + $0x50] sm:$0xff]  ;;  %p1221_p3 = scmp.lt.s32.totalorder %s1219_s25, %s1215_s24 }
  0x2d   :  { %981 = vmatpush3.msra.mxu1 %v86_v3  ;;  %v80_v17 = vld [vmem:[#allocation3 + $0x58] sm:$0xff]  ;;  %v81_v18 = vld [vmem:[#allocation3 + $0x60] sm:$0xff]  ;;  %v82_v19 = vld [vmem:[#allocation3 + $0x68] sm:$0xff] }
  0x2e   :  { %982 = vmatprep.subr.mxu1 %v85_v4  ;;  %v83_v20 = vld [vmem:[#allocation3 + $0x70] sm:$0xff]  ;;  %v84_v21 = vld [vmem:[#allocation3 + $0x78] sm:$0xff]  ;;  %v391_v22 = vld [vmem:[#allocation8 + $0x28] sm:$0xff]  ;;  %p1222_p4 = por %p1221_p3, %p1220_p2 }
  0x2f   :  { %983 = vmatpush3.msra.mxu1 %v85_v4  ;;  %v390_v23 = vld [vmem:[#allocation8 + $0x20] sm:$0xff]  ;;  %v389_v24 = vld [vmem:[#allocation8 + $0x18] sm:$0xff]  ;;  %v388_v25 = vld [vmem:[#allocation8 + $0x10] sm:$0xff] }
  0x30   :  { %985 = vmatmul.mubr.msk.f32.vlgmr.msra.gmra.mxu1 %vm96_vm0, %v70_v5  ;;  %1008 = vmatprep.subr.mxu1 %v393_v6  ;;  %v387_v26 = vld [vmem:[#allocation8 + $0x8] sm:$0xff]  ;;  %v386_v27 = vld [vmem:[#allocation8] sm:$0xff]  ;;  %p1223_p5 = pnand %p1222_p4, %p1216_p1 }
  0x31   :  { %987 = vmatprep.mubr.msk.f32.mxu1 %vm96_vm0, %v71_v7  ;;  %1009 = vmatpush3.msra.mxu1 %v393_v6  ;;  %v1317_v28 = vld [vmem:[%s1567_s2] ss:$0 sm:$0xff] }
  0x32   :  { %1010 = vmatprep.subr.mxu1 %v392_v8 }
  0x33   :  { %1011 = vmatpush3.msra.mxu1 %v392_v8 }
  0x34   :  { %988 = vmatmul.mubr.msk.f32.gmra.mxu1 %vm96_vm0, %v72_v9  ;;  %1012 = vmatprep.subr.mxu1 %v391_v22 }
  0x35   :  { %990 = vmatprep.mubr.msk.f32.mxu1 %vm96_vm0, %v73_v10  ;;  %1013 = vmatpush3.msra.mxu1 %v391_v22 }
  0x36   :  { %1014 = vmatprep.subr.mxu1 %v390_v23 }
  0x37   :  { %1015 = vmatpush3.msra.mxu1 %v390_v23 }
  0x38   :  { %991 = vmatmul.mubr.msk.f32.gmra.mxu1 %vm96_vm0, %v74_v11  ;;  %1016 = vmatprep.subr.mxu1 %v389_v24 }
  0x39   :  { %993 = vmatprep.mubr.msk.f32.mxu1 %vm96_vm0, %v75_v12  ;;  %1017 = vmatpush3.msra.mxu1 %v389_v24 }
  0x3a   :  { %1018 = vmatprep.subr.mxu1 %v388_v25 }
  0x3b   :  { %1019 = vmatpush3.msra.mxu1 %v388_v25 }
  0x3c   :  { %994 = vmatmul.mubr.msk.f32.gmra.mxu1 %vm96_vm0, %v76_v13  ;;  %1020 = vmatprep.subr.mxu1 %v387_v26 }
  0x3d   :  { %996 = vmatprep.mubr.msk.f32.mxu1 %vm96_vm0, %v77_v14  ;;  %1021 = vmatpush3.msra.mxu1 %v387_v26 }
  0x3e   :  { %1022 = vmatprep.subr.mxu1 %v386_v27 }
  0x3f   :  { %1023 = vmatpush3.msra.mxu1 %v386_v27 }
  0x40   :  { %997 = vmatmul.mubr.msk.f32.gmra.mxu1 %vm96_vm0, %v78_v15 }
  0x41   :  { %999 = vmatprep.mubr.msk.f32.mxu1 %vm96_vm0, %v79_v16 }
  0x44   :  { %1000 = vmatmul.mubr.msk.f32.gmra.mxu1 %vm96_vm0, %v80_v17 }
  0x45   :  { %1002 = vmatprep.mubr.msk.f32.mxu1 %vm96_vm0, %v81_v18 }
  0x48   :  { %1003 = vmatmul.mubr.msk.f32.gmra.mxu1 %vm96_vm0, %v82_v19 }
  0x49   :  { %1005 = vmatprep.mubr.msk.f32.mxu1 %vm96_vm0, %v83_v20 }
  0x4c   :  { %1006 = vmatmul.mubr.msk.f32.gmra.mxu1 %vm96_vm0, %v84_v21 }
  0xf0   :  { %v986_v29 = vpop.f32.mrf.mxu1 }
  0xf1   :  { %v1320_v30 = vadd.f32 %v986_v29, %v1317_v28 }
  0xf2   :  { %v211_v31 = vpop.f32.mrf.mxu1 }
  0xf3   :  { %v307_v32 = vmin.f32 %v1320_v30, 0.0  ;;  %v1324_v33 = vadd.f32 %v1317_v28, %v211_v31  ;;  %vm291_vm3 = vcmp.gt.f32.partialorder %v1320_v30, 0.0 }
  0xf4   :  { %v989_v34 = vpop.f32.mrf.mxu1 }
  0xf5   :  { %v324_v35 = vmul.f32 1.442695, %v307_v32  ;;  %v306_v36 = vmin.f32 %v1324_v33, 0.0  ;;  %v1328_v37 = vadd.f32 %v989_v34, %v1317_v28  ;;  %vm290_vm2 = vcmp.gt.f32.partialorder %v1324_v33, 0.0 }
  0xf6   :  { %v221_v38 = vpop.f32.mrf.mxu1 }
  0xf7   :  { %1091 = vpow2.f32 %v324_v35  ;;  %v322_v39 = vmul.f32 1.442695, %v306_v36  ;;  %v309_v40 = vmin.f32 %v1328_v37, 0.0  ;;  %v1332_v41 = vadd.f32 %v1317_v28, %v221_v38 }
  0xf8   :  { %v992_v42 = vpop.f32.mrf.mxu1  ;;  %vm293_vm4 = vcmp.gt.f32.partialorder %v1328_v37, 0.0 }
  0xf9   :  { %1093 = vpow2.f32 %v322_v39  ;;  %v328_v43 = vmul.f32 1.442695, %v309_v40  ;;  %v1335_v44 = vadd.f32 %v992_v42, %v1317_v28  ;;  %v308_v45 = vmin.f32 %v1332_v41, 0.0 }
  0xfa   :  { %v231_v46 = vpop.f32.mrf.mxu1  ;;  %vm292_vm5 = vcmp.gt.f32.partialorder %v1332_v41, 0.0 }
  0xfb   :  { %1095 = vpow2.f32 %v328_v43  ;;  %v311_v47 = vmin.f32 %v1335_v44, 0.0  ;;  %v1340_v48 = vadd.f32 %v1317_v28, %v231_v46  ;;  %v326_v49 = vmul.f32 1.442695, %v308_v45 }
  0xfc   :  { %v995_v50 = vpop.f32.mrf.mxu1  ;;  %vm295_vm7 = vcmp.gt.f32.partialorder %v1335_v44, 0.0 }
  0xfd   :  { %v332_v51 = vmul.f32 1.442695, %v311_v47  ;;  %v310_v52 = vmin.f32 %v1340_v48, 0.0  ;;  %v1344_v53 = vadd.f32 %v995_v50, %v1317_v28  ;;  %1097 = vpow2.f32 %v326_v49 }
  0xfe   :  { %v241_v54 = vpop.f32.mrf.mxu1  ;;  %vm294_vm6 = vcmp.gt.f32.partialorder %v1340_v48, 0.0 }
  0xff   :  { %1099 = vpow2.f32 %v332_v51  ;;  %v330_v55 = vmul.f32 1.442695, %v310_v52  ;;  %v313_v56 = vmin.f32 %v1344_v53, 0.0  ;;  %v1348_v57 = vadd.f32 %v1317_v28, %v241_v54 }
 0x100   :  { %v998_v58 = vpop.f32.mrf.mxu1  ;;  %vm297_vm9 = vcmp.gt.f32.partialorder %v1344_v53, 0.0 }
 0x101   :  { %1101 = vpow2.f32 %v330_v55  ;;  %v336_v59 = vmul.f32 1.442695, %v313_v56  ;;  %v1351_v60 = vadd.f32 %v998_v58, %v1317_v28  ;;  %v312_v61 = vmin.f32 %v1348_v57, 0.0 }
 0x102   :  { %v251_v62 = vpop.f32.mrf.mxu1  ;;  %vm296_vm8 = vcmp.gt.f32.partialorder %v1348_v57, 0.0 }
 0x103   :  { %1103 = vpow2.f32 %v336_v59  ;;  %v315_v63 = vmin.f32 %v1351_v60, 0.0  ;;  %v1356_v0 = vadd.f32 %v1317_v28, %v251_v62  ;;  %v334_v2 = vmul.f32 1.442695, %v312_v61 }
 0x104   :  { %v1092_v1 = vpop.eup %1091  ;;  %v1001_v3 = vpop.f32.mrf.mxu1  ;;  %vm299_vm11 = vcmp.gt.f32.partialorder %v1351_v60, 0.0 }
 0x105   :  { %v340_v4 = vmul.f32 1.442695, %v315_v63  ;;  %v314_v5 = vmin.f32 %v1356_v0, 0.0  ;;  %1105 = vpow2.f32 %v334_v2  ;;  %v1360_v7 = vadd.f32 %v1001_v3, %v1317_v28 }
 0x106   :  { %v1094_v6 = vpop.eup %1093  ;;  %v261_v8 = vpop.f32.mrf.mxu1  ;;  %v850_v9 = vadd.f32 -1.0, %v1092_v1  ;;  %vm298_vm10 = vcmp.gt.f32.partialorder %v1356_v0, 0.0 }
 0x107   :  { %1107 = vpow2.f32 %v340_v4  ;;  %v338_v10 = vmul.f32 1.442695, %v314_v5  ;;  %v1363_v11 = vadd.f32 %v1317_v28, %v261_v8  ;;  %v317_v13 = vmin.f32 %v1360_v7, 0.0 }
 0x108   :  { %v1096_v12 = vpop.eup %1095  ;;  %v1004_v14 = vpop.f32.mrf.mxu1  ;;  %v849_v15 = vadd.f32 -1.0, %v1094_v6  ;;  %v371_v23 = vsel %vm291_vm3, %v1320_v30, %v850_v9  ;;  %vm301_vm13 = vcmp.gt.f32.partialorder %v1360_v7, 0.0  ;;  %vm1247_vm3 = vmmov 0  }
 0x109   :  { %1109 = vpow2.f32 %v338_v10  ;;  %v316_v16 = vmin.f32 %v1363_v11, 0.0  ;;  %v1369_v17 = vadd.f32 %v1004_v14, %v1317_v28  ;;  %v344_v18 = vmul.f32 1.442695, %v317_v13 }
 0x10a   :  { %v271_v19 = vpop.f32.mrf.mxu1  ;;  %v370_v20 = vsel %vm290_vm2, %v1324_v33, %v849_v15  ;;  %v852_v21 = vadd.f32 -1.0, %v1096_v12  ;;  %v1098_v22 = vpop.eup %1097  ;;  %vm300_vm12 = vcmp.gt.f32.partialorder %v1363_v11, 0.0  ;;  %v1246_v13 = vmov 0.0  }
 0x10b   :  { %v342_v24 = vmul.f32 1.442695, %v316_v16  ;;  %v319_v25 = vmin.f32 %v1369_v17, 0.0  ;;  %v1376_v26 = vadd.f32 %v1317_v28, %v271_v19  ;;  %1024 = vmatprep.mubr.msk.f32.mxu1 %vm401_vm1, %v370_v20  ;;  %1111 = vpow2.f32 %v344_v18  ;;  %1048 = vmatprep.subr.mxu0 %v1246_v13 }
 0x10c   :  { %v1100_v27 = vpop.eup %1099  ;;  %1025 = vmatmul.mubr.msk.f32.vlgmr.msra.gmra.mxu1 %vm401_vm1, %v371_v23  ;;  %v1007_v29 = vpop.f32.mrf.mxu1  ;;  %v851_v31 = vadd.f32 -1.0, %v1098_v22  ;;  %v373_v38 = vsel %vm293_vm4, %v1328_v37, %v852_v21  ;;  %vm303_vm15 = vcmp.gt.f32.partialorder %v1369_v17, 0.0  ;;  %1080 = vmatprep.mubr.msk.f32.mxu0 %vm1247_vm3, %v1246_v13 }
 0x10d   :  { %1113 = vpow2.f32 %v342_v24  ;;  %v348_v30 = vmul.f32 1.442695, %v319_v25  ;;  %v318_v32 = vmin.f32 %v1376_v26, 0.0  ;;  %v1384_v34 = vadd.f32 %v1007_v29, %v1317_v28 }
 0x10e   :  { %v1102_v33 = vpop.eup %1101  ;;  %v281_v35 = vpop.f32.mrf.mxu1  ;;  %v372_v36 = vsel %vm292_vm5, %v1332_v41, %v851_v31  ;;  %v854_v39 = vadd.f32 -1.0, %v1100_v27  ;;  %vm302_vm14 = vcmp.gt.f32.partialorder %v1376_v26, 0.0  ;;  %v1446_v27 = vld [vmem:[%s1569_s4] ss:$0 sm:$0xff] }
 0x10f   :  { %1115 = vpow2.f32 %v348_v30  ;;  %v346_v40 = vmul.f32 1.442695, %v318_v32  ;;  %v1389_v42 = vadd.f32 %v1317_v28, %v281_v35  ;;  %1027 = vmatprep.mubr.msk.f32.mxu1 %vm401_vm1, %v372_v36  ;;  %v853_v43 = vadd.f32 -1.0, %v1102_v33 }
 0x110   :  { %v1104_v45 = vpop.eup %1103  ;;  %v321_v46 = vmin.f32 %v1384_v34, 0.0  ;;  %1028 = vmatmul.mubr.msk.f32.gmra.mxu1 %vm401_vm1, %v373_v38  ;;  %v375_v50 = vsel %vm295_vm7, %v1335_v44, %v854_v39  ;;  %vm305_vm2 = vcmp.gt.f32.partialorder %v1384_v34, 0.0 }
 0x111   :  { %1117 = vpow2.f32 %v346_v40  ;;  %v320_v41 = vmin.f32 %v1389_v42, 0.0  ;;  %v374_v37 = vsel %vm294_vm6, %v1340_v48, %v853_v43  ;;  %v856_v51 = vadd.f32 -1.0, %v1104_v45 }
 0x112   :  { %v352_v47 = vmul.f32 1.442695, %v321_v46  ;;  %1030 = vmatprep.mubr.msk.f32.mxu1 %vm401_vm1, %v374_v37  ;;  %v1106_v28 = vpop.eup %1105  ;;  %vm304_vm0 = vcmp.gt.f32.partialorder %v1389_v42, 0.0 }
 0x113   :  { %v350_v49 = vmul.f32 1.442695, %v320_v41  ;;  %v855_v54 = vadd.f32 -1.0, %v1106_v28  ;;  %v377_v56 = vsel %vm297_vm9, %v1344_v53, %v856_v51 }
 0x114   :  { %v1108_v52 = vpop.eup %1107  ;;  %1119 = vpow2.f32 %v352_v47  ;;  %1031 = vmatmul.mubr.msk.f32.gmra.mxu1 %vm401_vm1, %v375_v50 }
 0x115   :  { %1121 = vpow2.f32 %v350_v49  ;;  %v376_v48 = vsel %vm296_vm8, %v1348_v57, %v855_v54  ;;  %v858_v44 = vadd.f32 -1.0, %v1108_v52 }
 0x116   :  { %v1110_v55 = vpop.eup %1109  ;;  %1033 = vmatprep.mubr.msk.f32.mxu1 %vm401_vm1, %v376_v48 }
 0x117   :  { %v857_v58 = vadd.f32 -1.0, %v1110_v55  ;;  %v379_v57 = vsel %vm299_vm11, %v1351_v60, %v858_v44 }
 0x118   :  { %1034 = vmatmul.mubr.msk.f32.gmra.mxu1 %vm401_vm1, %v377_v56  ;;  %v1112_v59 = vpop.eup %1111 }
 0x119   :  { %v378_v61 = vsel %vm298_vm10, %v1356_v0, %v857_v58  ;;  %v860_v1 = vadd.f32 -1.0, %v1112_v59 }
 0x11a   :  { %v1114_v62 = vpop.eup %1113  ;;  %1036 = vmatprep.mubr.msk.f32.mxu1 %vm401_vm1, %v378_v61 }
 0x11b   :  { %v859_v63 = vadd.f32 -1.0, %v1114_v62  ;;  %v381_v0 = vsel %vm301_vm13, %v1360_v7, %v860_v1 }
 0x11c   :  { %v1116_v2 = vpop.eup %1115  ;;  %1037 = vmatmul.mubr.msk.f32.gmra.mxu1 %vm401_vm1, %v379_v57 }
 0x11d   :  { %v380_v53 = vsel %vm300_vm12, %v1363_v11, %v859_v63  ;;  %v862_v5 = vadd.f32 -1.0, %v1116_v2 }
 0x11e   :  { %v1118_v3 = vpop.eup %1117  ;;  %1039 = vmatprep.mubr.msk.f32.mxu1 %vm401_vm1, %v380_v53 }
 0x11f   :  { %v861_v4 = vadd.f32 -1.0, %v1118_v3  ;;  %v383_v9 = vsel %vm303_vm15, %v1369_v17, %v862_v5 }
 0x120   :  { %1040 = vmatmul.mubr.msk.f32.gmra.mxu1 %vm401_vm1, %v381_v0 }
 0x121   :  { %v1120_v60 = vpop.eup %1119  ;;  %v382_v6 = vsel %vm302_vm14, %v1376_v26, %v861_v4 }
 0x122   :  { %v1122_v8 = vpop.eup %1121  ;;  %1042 = vmatprep.mubr.msk.f32.mxu1 %vm401_vm1, %v382_v6  ;;  %v864_v11 = vadd.f32 -1.0, %v1120_v60 }
 0x123   :  { %v863_v10 = vadd.f32 -1.0, %v1122_v8 }
 0x124   :  { %1043 = vmatmul.mubr.msk.f32.gmra.mxu1 %vm401_vm1, %v383_v9  ;;  %v385_v12 = vsel %vm305_vm2, %v1384_v34, %v864_v11 }
 0x125   :  { %v384_v7 = vsel %vm304_vm0, %v1389_v42, %v863_v10 }
 0x126   :  { %1045 = vmatprep.mubr.msk.f32.mxu1 %vm401_vm1, %v384_v7 }
 0x128   :  { %1046 = vmatmul.mubr.msk.f32.gmra.mxu1 %vm401_vm1, %v385_v12 }
 0x1cc   :  { %v1433_v14 = vpop.f32.mrf.mxu1 }
 0x1ce   :  { %v1435_v15 = vpop.f32.mrf.mxu1 }
 0x1d0   :  { %v1437_v16 = vpop.f32.mrf.mxu1 }
 0x1d2   :  { %v1439_v17 = vpop.f32.mrf.mxu1 }
 0x1d4   :  { %v1032_v18 = vpop.f32.mrf.mxu1 }
 0x1d5   :  { %v1480_v4 = vadd.f32 %v1032_v18, %v1446_v27 }
 0x1d6   :  { %v1441_v19 = vpop.f32.mrf.mxu1 }
 0x1d7   :  { %v616_v10 = vmin.f32 %v1480_v4, 0.0  ;;  %v1488_v11 = vadd.f32 %v1446_v27, %v1441_v19  ;;  %vm600_vm14 = vcmp.gt.f32.partialorder %v1480_v4, 0.0 }
 0x1d8   :  { %v1035_v20 = vpop.f32.mrf.mxu1 }
 0x1d9   :  { %v1468_v58 = vadd.f32 %v1035_v20, %v1446_v27  ;;  %v615_v19 = vmin.f32 %v1488_v11, 0.0  ;;  %vm599_vm15 = vcmp.gt.f32.partialorder %v1488_v11, 0.0 }
 0x1da   :  { %v546_v21 = vpop.f32.mrf.mxu1 }
 0x1db   :  { %v618_v63 = vmin.f32 %v1468_v58, 0.0  ;;  %v1475_v1 = vadd.f32 %v1446_v27, %v546_v21  ;;  %v1494_v21 = vadd.f32 %v1437_v16, %v1446_v27  ;;  %v1504_v16 = vadd.f32 %v1446_v27, %v1439_v17 }
 0x1dc   :  { %v1038_v22 = vpop.f32.mrf.mxu1  ;;  %vm602_vm12 = vcmp.gt.f32.partialorder %v1468_v58, 0.0 }
 0x1dd   :  { %v1460_v28 = vadd.f32 %v1038_v22, %v1446_v27  ;;  %v641_v5 = vmul.f32 1.442695, %v618_v63  ;;  %v617_v60 = vmin.f32 %v1475_v1, 0.0  ;;  %v637_v22 = vmul.f32 1.442695, %v616_v10 }
 0x1de   :  { %v556_v23 = vpop.f32.mrf.mxu1  ;;  %v613_v17 = vmin.f32 %v1504_v16, 0.0  ;;  %vm601_vm13 = vcmp.gt.f32.partialorder %v1475_v1, 0.0  ;;  %vm598_vm0 = vcmp.gt.f32.partialorder %v1494_v21, 0.0  ;;  %vm597_vm2 = vcmp.gt.f32.partialorder %v1504_v16, 0.0 }
 0x1df   :  { %v620_v51 = vmin.f32 %v1460_v28, 0.0  ;;  %v1465_v52 = vadd.f32 %v1446_v27, %v556_v23  ;;  %v639_v7 = vmul.f32 1.442695, %v617_v60  ;;  %vm604_vm10 = vcmp.gt.f32.partialorder %v1460_v28, 0.0 }
 0x1e0   :  { %v1041_v24 = vpop.f32.mrf.mxu1 }
 0x1e1   :  { %v1453_v42 = vadd.f32 %v1041_v24, %v1446_v27  ;;  %v645_v44 = vmul.f32 1.442695, %v620_v51  ;;  %v619_v59 = vmin.f32 %v1465_v52, 0.0  ;;  %vm603_vm11 = vcmp.gt.f32.partialorder %v1465_v52, 0.0 }
 0x1e2   :  { %v566_v25 = vpop.f32.mrf.mxu1 }
 0x1e3   :  { %v622_v41 = vmin.f32 %v1453_v42, 0.0  ;;  %v1457_v37 = vadd.f32 %v1446_v27, %v566_v25  ;;  %v643_v2 = vmul.f32 1.442695, %v619_v59  ;;  %vm606_vm8 = vcmp.gt.f32.partialorder %v1453_v42, 0.0 }
 0x1e4   :  { %v1044_v26 = vpop.f32.mrf.mxu1 }
 0x1e5   :  { %v582_v31 = vadd.f32 %v1044_v26, %v1446_v27  ;;  %v649_v49 = vmul.f32 1.442695, %v622_v41  ;;  %v621_v50 = vmin.f32 %v1457_v37, 0.0  ;;  %v614_v26 = vmin.f32 %v1494_v21, 0.0 }
 0x1e6   :  { %v576_v29 = vpop.f32.mrf.mxu1  ;;  %vm605_vm9 = vcmp.gt.f32.partialorder %v1457_v37, 0.0 }
 0x1e7   :  { %v624_v34 = vmin.f32 %v582_v31, 0.0  ;;  %v577_v35 = vadd.f32 %v1446_v27, %v576_v29  ;;  %v647_v54 = vmul.f32 1.442695, %v621_v50  ;;  %vm608_vm6 = vcmp.gt.f32.partialorder %v582_v31, 0.0 }
 0x1e8   :  { %v1047_v30 = vpop.f32.mrf.mxu1  ;;  %v635_v29 = vmul.f32 1.442695, %v615_v19 }
 0x1e9   :  { %v592_v32 = vadd.f32 %v1047_v30, %v1446_v27  ;;  %v653_v43 = vmul.f32 1.442695, %v624_v34  ;;  %v623_v45 = vmin.f32 %v577_v35, 0.0  ;;  %vm607_vm7 = vcmp.gt.f32.partialorder %v577_v35, 0.0 }
 0x1ea   :  { %v586_v33 = vpop.f32.mrf.mxu1  ;;  %v633_v34 = vmul.f32 1.442695, %v614_v26 }
 0x1eb   :  { %v626_v36 = vmin.f32 %v592_v32, 0.0  ;;  %v587_v38 = vadd.f32 %v1446_v27, %v586_v33  ;;  %v651_v47 = vmul.f32 1.442695, %v623_v45  ;;  %vm610_vm4 = vcmp.gt.f32.partialorder %v592_v32, 0.0 }
 0x1ec   :  { %v1512_v33 = vadd.f32 %v1433_v14, %v1446_v27  ;;  %v517_v14 = vadd.f32 %v1446_v27, %v1435_v15 }
 0x1ed   :  { %v657_v39 = vmul.f32 1.442695, %v626_v36  ;;  %v625_v40 = vmin.f32 %v587_v38, 0.0  ;;  %vm609_vm5 = vcmp.gt.f32.partialorder %v587_v38, 0.0 }
 0x1ee   :  { %v611_v41 = vmin.f32 %v517_v14, 0.0  ;;  %vm596_vm3 = vcmp.gt.f32.partialorder %v1512_v33, 0.0 }
 0x1ef   :  { %1123 = vpow2.f32 %v657_v39  ;;  %v655_v46 = vmul.f32 1.442695, %v625_v40  ;;  %v612_v39 = vmin.f32 %v1512_v33, 0.0  ;;  %v631_v40 = vmul.f32 1.442695, %v613_v17 }
 0x1f1   :  { %1125 = vpow2.f32 %v655_v46  ;;  %v629_v46 = vmul.f32 1.442695, %v612_v39 }
 0x1f2   :  { %1127 = vpow2.f32 %v653_v43 }
 0x1f3   :  { %1129 = vpow2.f32 %v651_v47  ;;  %v627_v47 = vmul.f32 1.442695, %v611_v41 }
 0x1f4   :  { %1131 = vpow2.f32 %v649_v49 }
 0x1f5   :  { %1133 = vpow2.f32 %v647_v54 }
 0x1f6   :  { %1135 = vpow2.f32 %v645_v44 }
 0x1f7   :  { %1137 = vpow2.f32 %v643_v2 }
 0x1f8   :  { %1139 = vpow2.f32 %v641_v5 }
 0x1f9   :  { %1141 = vpow2.f32 %v639_v7 }
 0x1fa   :  { %1143 = vpow2.f32 %v637_v22 }
 0x1fb   :  { %1145 = vpow2.f32 %v635_v29 }
 0x1fc   :  { %v1124_v55 = vpop.eup %1123  ;;  %1147 = vpow2.f32 %v633_v34 }
 0x1fd   :  { %v897_v48 = vadd.f32 -1.0, %v1124_v55  ;;  %1149 = vpow2.f32 %v631_v40 }
 0x1fe   :  { %v1126_v56 = vpop.eup %1125  ;;  %1151 = vpow2.f32 %v629_v46 }
 0x1ff   :  { %v690_v61 = vsel %vm610_vm4, %v592_v32, %v897_v48  ;;  %v896_v62 = vadd.f32 -1.0, %v1126_v56  ;;  %v1128_v57 = vpop.eup %1127  ;;  %1153 = vpow2.f32 %v627_v47  ;;  %vm595_vm4 = vcmp.gt.f32.partialorder %v517_v14, 0.0 }
 0x200   :  { %1049 = vmatpush3.xpose.msk.msra.mxu0 %vm401_vm1, %v690_v61  ;;  %v895_v3 = vadd.f32 -1.0, %v1128_v57  ;;  %v1130_v0 = vpop.eup %1129 }
 0x201   :  { %1050 = vmatprep.subr.mxu0 %v1246_v13  ;;  %v689_v53 = vsel %vm609_vm5, %v587_v38, %v896_v62  ;;  %v894_v8 = vadd.f32 -1.0, %v1130_v0  ;;  %v1132_v9 = vpop.eup %1131 }
 0x202   :  { %v688_v6 = vsel %vm608_vm6, %v582_v31, %v895_v3  ;;  %v893_v18 = vadd.f32 -1.0, %v1132_v9  ;;  %v1134_v20 = vpop.eup %1133  ;;  %v693_v3 = vstv %s1571_s6 }
 0x203   :  { %v687_v12 = vsel %vm607_vm7, %v577_v35, %v894_v8  ;;  %v892_v24 = vadd.f32 -1.0, %v1134_v20  ;;  %v1136_v25 = vpop.eup %1135 }
 0x204   :  { %1051 = vmatpush3.xpose.msk.msra.mxu0 %vm401_vm1, %v689_v53  ;;  %v686_v23 = vsel %vm606_vm8, %v1453_v42, %v893_v18  ;;  %v891_v30 = vadd.f32 -1.0, %v1136_v25  ;;  %v1138_v32 = vpop.eup %1137  ;;  %v691_v53 = vld [vmem:[%s1570_s5] sm:$0x1] }
 0x205   :  { %1052 = vmatprep.subr.mxu0 %v1246_v13  ;;  %v685_v31 = vsel %vm605_vm9, %v1457_v37, %v892_v24  ;;  %v890_v36 = vadd.f32 -1.0, %v1138_v32  ;;  %v1140_v38 = vpop.eup %1139 }
 0x206   :  { %v684_v35 = vsel %vm604_vm10, %v1460_v28, %v891_v30  ;;  %v889_v43 = vadd.f32 -1.0, %v1140_v38  ;;  %v1142_v45 = vpop.eup %1141 }
 0x207   :  { %v683_v42 = vsel %vm603_vm11, %v1465_v52, %v890_v36  ;;  %v888_v15 = vadd.f32 -1.0, %v1142_v45  ;;  %v1144_v27 = vpop.eup %1143 }
 0x208   :  { %1053 = vmatpush3.xpose.msk.msra.mxu0 %vm401_vm1, %v688_v6  ;;  %v682_v37 = vsel %vm602_vm12, %v1468_v58, %v889_v43  ;;  %v887_v49 = vadd.f32 -1.0, %v1144_v27  ;;  %v1146_v50 = vpop.eup %1145 }
 0x209   :  { %1054 = vmatprep.subr.mxu0 %v1246_v13  ;;  %v681_v28 = vsel %vm601_vm13, %v1475_v1, %v888_v15  ;;  %v886_v52 = vadd.f32 -1.0, %v1146_v50  ;;  %v1148_v54 = vpop.eup %1147 }
 0x20a   :  { %v680_v51 = vsel %vm600_vm14, %v1480_v4, %v887_v49  ;;  %v885_v48 = vadd.f32 -1.0, %v1148_v54  ;;  %v1150_v56 = vpop.eup %1149 }
 0x20b   :  { %v679_v55 = vsel %vm599_vm15, %v1488_v11, %v886_v52  ;;  %v884_v44 = vadd.f32 -1.0, %v1150_v56  ;;  %v1152_v59 = vpop.eup %1151 }
 0x20c   :  { %1055 = vmatpush3.xpose.msk.msra.mxu0 %vm401_vm1, %v687_v12  ;;  %v678_v58 = vsel %vm598_vm0, %v1494_v21, %v885_v48  ;;  %v883_v62 = vadd.f32 -1.0, %v1152_v59  ;;  %v1154_v57 = vpop.eup %1153 }
 0x20d   :  { %1056 = vmatprep.subr.mxu0 %v1246_v13  ;;  %v677_v61 = vsel %vm597_vm2, %v1504_v16, %v884_v44  ;;  %v882_v1 = vadd.f32 -1.0, %v1154_v57 }
 0x20e   :  { %v676_v63 = vsel %vm596_vm3, %v1512_v33, %v883_v62 }
 0x20f   :  { %v675_v2 = vsel %vm595_vm4, %v517_v14, %v882_v1 }
 0x210   :  { %1057 = vmatpush3.xpose.msk.msra.mxu0 %vm401_vm1, %v686_v23 }
 0x211   :  { %1058 = vmatprep.subr.mxu0 %v1246_v13 }
 0x214   :  { %1059 = vmatpush3.xpose.msk.msra.mxu0 %vm401_vm1, %v685_v31 }
 0x215   :  { %1060 = vmatprep.subr.mxu0 %v1246_v13 }
 0x218   :  { %1061 = vmatpush3.xpose.msk.msra.mxu0 %vm401_vm1, %v684_v35 }
 0x219   :  { %1062 = vmatprep.subr.mxu0 %v1246_v13 }
 0x21c   :  { %1063 = vmatpush3.xpose.msk.msra.mxu0 %vm401_vm1, %v683_v42 }
 0x21d   :  { %1064 = vmatprep.subr.mxu0 %v1246_v13 }
 0x220   :  { %1065 = vmatpush3.xpose.msk.msra.mxu0 %vm401_vm1, %v682_v37 }
 0x221   :  { %1066 = vmatprep.subr.mxu0 %v1246_v13 }
 0x224   :  { %1067 = vmatpush3.xpose.msk.msra.mxu0 %vm401_vm1, %v681_v28 }
 0x225   :  { %1068 = vmatprep.subr.mxu0 %v1246_v13 }
 0x228   :  { %1069 = vmatpush3.xpose.msk.msra.mxu0 %vm401_vm1, %v680_v51 }
 0x229   :  { %1070 = vmatprep.subr.mxu0 %v1246_v13 }
 0x22c   :  { %1071 = vmatpush3.xpose.msk.msra.mxu0 %vm401_vm1, %v679_v55 }
 0x22d   :  { %1072 = vmatprep.subr.mxu0 %v1246_v13 }
 0x230   :  { %1073 = vmatpush3.xpose.msk.msra.mxu0 %vm401_vm1, %v678_v58 }
 0x231   :  { %1074 = vmatprep.subr.mxu0 %v1246_v13 }
 0x234   :  { %1075 = vmatpush3.xpose.msk.msra.mxu0 %vm401_vm1, %v677_v61 }
 0x235   :  { %1076 = vmatprep.subr.mxu0 %v1246_v13 }
 0x238   :  { %1077 = vmatpush3.xpose.msk.msra.mxu0 %vm401_vm1, %v676_v63 }
 0x239   :  { %1078 = vmatprep.subr.mxu0 %v1246_v13 }
 0x23c   :  { %1079 = vmatpush3.xpose.msk.msra.mxu0 %vm401_vm1, %v675_v2 }
 0x23f   :  { %1081 = vmatmul.mubr.msk.f32.vlgmr.msra.gmra.mxu0 %vm401_vm1, %v691_v53 }
 0x2ff   :  { %v811_v0 = vpop.f32.mrf.mxu0 }
 0x300   :  { %v812_v4 = vadd.f32 %v811_v0, %v693_v3 }
 0x301   :  { %v1082_v13 = vpop.f32.mrf.mxu0 }
 0x302   :  { %815 = vst [vmem:[#allocation9] sm:$0x1] %v812_v4 }
 0x303   :  { %1226 = shalt.err (!%p1223_p5)
}
 0x304   :  { %825 = dma.vmem_to_hbm [thread:$0]  %s823_s23, 16, %s1572_s7, [#allocation5]  }
 0x305   :  { %1239 = dma.done.wait [#allocation5], 16  }
 0x306   :  { %1240 = vsyncadd [#allocation5], 4294967280 }
 0x307   :  { %829 = vsyncpa [#allocation4], 1 }
 0x308   :  { %830 = vsyncpa [#allocation7], 1 }
 0x309   :  { %831 = vsyncpa [#allocation5], 1 }

</bundles_post_ra>
